<compile_context>
chip_gen: v5e
topology: v5e:2x2
jax: 0.10.0
libtpu: 0.0.40
codegen_flags: <defaults>
</compile_context>

<pallas_src>
import jax
import jax.numpy as jnp
from jax.experimental import pallas as pl
from jax.experimental.pallas import tpu as pltpu

LANES = 128


def _mae_kernel(a_ref, b_ref, o_ref):
    # Pure VPU elementwise hot path on the whole VMEM tile.  Dtype promotion
    # happens here (hides entirely under the block DMA).
    dt = o_ref.dtype
    o_ref[...] = jnp.abs(a_ref[...].astype(dt) - b_ref[...].astype(dt))


def _sublane_multiple(dtype):
    itemsize = jnp.dtype(dtype).itemsize
    if itemsize >= 4:
        return 8
    if itemsize == 2:
        return 16
    return 32


def _default_block_bytes():
    # Per-buffer block size (perf review): ~2 MiB v5e, 2-4 MiB v6e, 4-6 MiB v7x.
    try:
        kind = jax.devices()[0].device_kind.lower()
    except Exception:
        return 4 << 20
    if "v5 lite" in kind or "v5e" in kind or "v5litepod" in kind:
        return 2 << 20
    if "v7" in kind or "7x" in kind:
        return 6 << 20
    return 4 << 20


def mae_loss(inputs, targets, *, block_bytes=None, use_pallas=None):
    """Pallas equivalent of MAELoss.forward: (inputs - targets).abs().

    Output dtype follows JAX/PyTorch promotion of (inputs, targets); shape
    matches `inputs`. Broadcasting between inputs/targets is not supported
    (shapes must match, as in the reference usage).
    """
    assert inputs.shape == targets.shape, "shapes must match"
    orig_shape = inputs.shape
    out_dtype = jnp.result_type(inputs.dtype, targets.dtype)
    out_itemsize = jnp.dtype(out_dtype).itemsize
    n = int(inputs.size)

    if use_pallas is None:
        # Below ~1 MiB, launch/plumbing dominates a memory-bound elementwise op.
        use_pallas = n * out_itemsize >= (1 << 20)

    lane_aligned = n > 0 and (n % LANES == 0)
    if (not use_pallas) or (not lane_aligned):
        # Fallback (also used for ragged sizes, per perf review): a fused XLA
        # sub+abs is a single HBM-roofline pass and avoids the extra pad/slice
        # passes a lane-dense Pallas slab would need when n % 128 != 0.
        return jnp.abs(inputs.astype(out_dtype) - targets.astype(out_dtype))

    # Lane-dense 2-D slab: width fixed at 128; each block spans the full width
    # so every block is one fully contiguous HBM DMA with unmasked wide stores.
    # reshape of a contiguous buffer is a free bitcast (no HBM pass).
    rows = n // LANES
    a2 = inputs.reshape(rows, LANES)
    b2 = targets.reshape(rows, LANES)

    # Strictest sublane multiple across the three arrays sharing this block shape.
    sub = max(_sublane_multiple(d) for d in (inputs.dtype, targets.dtype, out_dtype))

    if block_bytes is None:
        block_bytes = _default_block_bytes()

    # Rows per block: ~block_bytes for the widest (output) buffer, rounded to
    # the sublane multiple, and capped near half the rows so the grid has >= 2
    # steps whenever legal (keeps both v7x TensorCores busy via the "parallel"
    # axis; negligible cost on single-TC v5e/v6e).
    bytes_rows = max(sub, (block_bytes // (LANES * out_itemsize)) // sub * sub)
    half_rows = max(sub, pl.cdiv(pl.cdiv(rows, 2), sub) * sub)
    blk_rows = min(bytes_rows, half_rows)
    if blk_rows >= rows:
        blk_rows = rows  # single full-extent block (always a legal block shape)
    grid = (pl.cdiv(rows, blk_rows),)

    # 3 arrays x 2 buffers x block_bytes plus headroom; capped for v7x's 64 MiB/TC.
    vmem_limit = int(min(64 << 20, max(32 << 20, 8 * block_bytes)))

    in_bytes = (inputs.size * jnp.dtype(inputs.dtype).itemsize
                + targets.size * jnp.dtype(targets.dtype).itemsize)

    out2 = pl.pallas_call(
        _mae_kernel,
        out_shape=jax.ShapeDtypeStruct((rows, LANES), out_dtype),
        grid_spec=pltpu.PrefetchScalarGridSpec(
            num_scalar_prefetch=0,
            grid=grid,
            in_specs=[
                pl.BlockSpec((blk_rows, LANES), lambda i: (i, 0)),
                pl.BlockSpec((blk_rows, LANES), lambda i: (i, 0)),
            ],
            out_specs=pl.BlockSpec((blk_rows, LANES), lambda i: (i, 0)),
        ),
        compiler_params=pltpu.CompilerParams(
            dimension_semantics=("parallel",),
            vmem_limit_bytes=vmem_limit,
        ),
        cost_estimate=pl.CostEstimate(
            flops=2 * n,
            transcendentals=0,
            bytes_accessed=int(in_bytes + n * out_itemsize),
        ),
    )(a2, b2)

    return out2.reshape(orig_shape)


if __name__ == "__main__":
    key = jax.random.PRNGKey(0)
    k1, k2, k3, k4, k5, k6 = jax.random.split(key, 6)

    # 1) Small NCHW example consistent with the module's typical usage (n is a
    #    multiple of 128); force the Pallas path so the kernel is exercised.
    x = jax.random.normal(k1, (2, 4, 16, 16), dtype=jnp.float32)
    y = jax.random.normal(k2, (2, 4, 16, 16), dtype=jnp.float32)
    out = jax.block_until_ready(mae_loss(x, y, use_pallas=True))
    ref = jnp.abs(x - y)
    assert out.shape == ref.shape and out.dtype == ref.dtype
    assert jnp.allclose(out, ref, atol=0.0, rtol=0.0)

    # 2) Mixed dtype (bf16 vs f32 -> promotion happens inside the kernel) with
    #    a small block size to exercise the multi-step pipelined grid including
    #    a partial last row-block (rows = 136, blk_rows = 16 -> 9 steps).
    x2 = jax.random.normal(k3, (2, 4, 17, 128), dtype=jnp.bfloat16)
    y2 = jax.random.normal(k4, (2, 4, 17, 128), dtype=jnp.float32)
    out2 = jax.block_until_ready(
        mae_loss(x2, y2, use_pallas=True, block_bytes=8192))
    ref2 = jnp.abs(x2.astype(jnp.float32) - y2)
    assert out2.shape == ref2.shape and out2.dtype == ref2.dtype
    assert jnp.allclose(out2, ref2, atol=0.0, rtol=0.0)

    # 3) Ragged size (n % 128 != 0) takes the fused-XLA fallback (per perf
    #    review: avoids the pad + slice HBM passes); verify dispatch + values.
    x3 = jax.random.normal(k5, (3, 5, 17, 19), dtype=jnp.float32)
    y3 = jax.random.normal(k6, (3, 5, 17, 19), dtype=jnp.float32)
    out3 = jax.block_until_ready(mae_loss(x3, y3))
    ref3 = jnp.abs(x3 - y3)
    assert out3.shape == ref3.shape and out3.dtype == ref3.dtype
    assert jnp.allclose(out3, ref3, atol=0.0, rtol=0.0)

    print("KERNEL_OK")
</pallas_src>

<mosaic_0001>
module attributes {stable_mosaic.version = 11 : i64} {
  func.func @_mae_kernel(%arg0: i32, %arg1: memref<8x128xf32, #tpu.memory_space<vmem>>, %arg2: memref<8x128xf32, #tpu.memory_space<vmem>>, %arg3: memref<8x128xf32, #tpu.memory_space<vmem>>) attributes {dimension_semantics = [#tpu.dimension_semantics<parallel>], iteration_bounds = array<i64: 2>, scalar_prefetch = 0 : i64, scratch_operands = 0 : i64, tpu.core_type = #tpu.core_type<tc>, window_params = [{transform_indices = @transform_0, window_bounds = array<i64: 8, 128>}, {transform_indices = @transform_1, window_bounds = array<i64: 8, 128>}, {transform_indices = @transform_2, window_bounds = array<i64: 8, 128>}]} {
    %c0 = arith.constant 0 : index
    %c0_0 = arith.constant 0 : index
    %0 = vector.load %arg1[%c0, %c0_0] : memref<8x128xf32, #tpu.memory_space<vmem>>, vector<8x128xf32>
    %c0_1 = arith.constant 0 : index
    %c0_2 = arith.constant 0 : index
    %1 = vector.load %arg2[%c0_1, %c0_2] : memref<8x128xf32, #tpu.memory_space<vmem>>, vector<8x128xf32>
    %2 = arith.subf %0, %1 : vector<8x128xf32>
    %3 = math.absf %2 : vector<8x128xf32>
    %c0_3 = arith.constant 0 : index
    %c0_4 = arith.constant 0 : index
    %4 = vector.load %arg3[%c0_3, %c0_4] : memref<8x128xf32, #tpu.memory_space<vmem>>, vector<8x128xf32>
    tpu.vector_store %arg3[%c0_3, %c0_4], %3 {strides = array<i32>} : memref<8x128xf32, #tpu.memory_space<vmem>>, vector<8x128xf32>,
    return
  }
  func.func @transform_0(%arg0: i32) -> (i32, i32) {
    %c0_i32 = arith.constant 0 : i32
    %c0_i32_0 = arith.constant 0 : i32
    return %arg0, %c0_i32 : i32, i32
  }
  func.func @transform_1(%arg0: i32) -> (i32, i32) {
    %c0_i32 = arith.constant 0 : i32
    %c0_i32_0 = arith.constant 0 : i32
    return %arg0, %c0_i32 : i32, i32
  }
  func.func @transform_2(%arg0: i32) -> (i32, i32) {
    %c0_i32 = arith.constant 0 : i32
    %c0_i32_0 = arith.constant 0 : i32
    return %arg0, %c0_i32 : i32, i32
  }
}

</mosaic_0001>

<bundles_post_ra>
// kernel: tpu_custom_call.1
= control target key start
LH: loop header
LB: loop body
LE: loop exit
PB: predicated region body
PF: predicated region fallthrough
CT: control target
= control target key end

     0   :  { %7 = vsyncpa [#allocation3], 0  ;;  %s687_s0 = inlined_call_operand.hbm [shape: f32[16,128], index: 0, kind: input, shape index: {}]   ;;  %s688_s1 = inlined_call_operand.hbm [shape: f32[16,128], index: 1, kind: input, shape index: {}]   ;;  %s689_s2 = inlined_call_operand.hbm [shape: f32[16,128], index: 2, kind: output, shape index: {}]  }
   0x1   :  { %9 = vsyncpa [#allocation3 + $0x1], 0 }
   0x2   :  { %10 = vsyncpa [#allocation6], 0 }
   0x3   :  { %12 = vsyncpa [#allocation6 + $0x1], 0 }
   0x4   :  { %13 = vsyncpa [#allocation4], 0 }
   0x5   :  { %15 = vsyncpa [#allocation4 + $0x1], 0  ;;  %s527_s9 = smov 0   ;;  %s529_s10 = smov 0  }
   0x6   :  { %s531_s11 = smov 0   ;;  %s533_s12 = smov 0  }
   0x7 LB: > { %s548_s13 = sadd.s32 4294967295, %s510_s12   ;;  %s314_s14 = sadd.s32 4294967294, %s510_s12   ;;  %s510_s12 = sphi %s533_s12, %s700_s12   ;;  %s506_s11 = sphi %s531_s11, %s699_s11   ;;  %s502_s10 = sphi %s529_s10, %s698_s10   ;;  %s498_s9 = sphi %s527_s9, %s697_s9  }
   0x8   : > { %s552_s15 = sadd.s32 1, %s510_s12   ;;  %s28_s16 = sadd.s32 1, %s506_s11 }
   0x9   : > { %s25_s17 = ssub.s32 %s510_s12, %s552_s15  ;;  %p35_p0 = scmp.ne.s32.totalorder %s506_s11, %s502_s10 }
   0xa   : > { %p26_p1 = scmp.eq.s32.totalorder %s25_s17, 0  ;;  %p36_p2 = scmp.eq.s32.totalorder %s510_s12, 0 }
   0xb   : > { %p41_p3 = scmp.ne.s32.totalorder %s502_s10, %s498_s9  ;;  %p42_p4 = scmp.eq.s32.totalorder %s548_s13, 0 }
   0xc   : > { %s564_s18 = scalar_select %p26_p1, %s506_s11, %s28_s16  }
   0xd   : > { %p566_p5 = por %p36_p2, %p35_p0  ;;  %p570_p6 = por %p42_p4, %p41_p3 }
   0xe   : > { %p91_p7 = scmp.eq.s32.totalorder %s548_s13, 1  ;;  %p97_p8 = scmp.eq.s32.totalorder %s314_s14, 1 }
   0xf   : > { %p346_p10 = scmp.lt.s32.totalorder %s510_s12, 2  ;;  %s586_s23 = sand.u32 1, %s506_s11  }
  0x10   : > { %p577_p11 = por %p91_p7, %p35_p0  ;;  %p581_p12 = por %p97_p8, %p41_p3 }
  0x11   : > { %s318_s24 = sshll.u32 %s510_s12, 3  ;;  %s317_s25 = sshll.u32 %s586_s23, 3 }
  0x12   : > { %s125_s28 = scalar_lea.hbm %s687_s0, %s318_s24  ;;  %s121_s30 = scalar_lea.vmem [#allocation2], %s317_s25 }
  0x13   : > { %s127_s29 = sshll.u32 %s125_s28, 4  ;;  %s129_s3 = sshll.u32 %s121_s30, 4  ;;  %s128_s29 = int_to_ptr.hbm [resolvable:$true] %s127_s29  ;;  %s130_s3 = int_to_ptr.vmem [resolvable:$true] %s129_s3 }
  0x14   : > { %p595_p13 = pnand %p346_p10, %p566_p5  ;;  %p321_p0 = scmp.ge.s32.totalorder %s510_s12, 1 }
  0x15   : > { %p153_p1 = scmp.lt.s32.totalorder %s510_s12, 3  ;;  %s118_s5 = scalar_lea.sflag [#allocation3], %s586_s23 }
  0x16   : > { %s380_s6 = sshra.s32 %s128_s29, 4  ;;  %p384_p3 = pneg %p595_p13  ;;  %s381_s6 = int_to_ptr.hbm [resolvable:$true] %s380_s6 }
  0x17   : > { %s382_s7 = scalar_lea.hbm %s381_s6, 8  ;;  %s387_s16 = scalar_lea.hbm %s687_s0, 16 }
  0x18   : > { %p383_p2 = scmp.ne.s32.totalorder %s381_s6, %s382_s7  ;;  %p388_p5 = scmp.lt.s32.totalorder %s381_s6, %s687_s0 }
  0x19   : > { %p389_p8 = scmp.lt.s32.totalorder %s387_s16, %s382_s7 }
  0x1a   : > { %p385_p4 = pnand %p384_p3, %p383_p2 }
  0x1b   : > { %p390_p10 = por %p389_p8, %p388_p5 }
  0x1c   : > { %p386_p7 = pneg %p385_p4 }
  0x1e   : > { %p391_p9 = pnand %p390_p10, %p386_p7 }
  0x20   : > { %394 = shalt.err (!%p391_p9)
}
  0x21   : > { %338 = dma.hbm_to_vmem [thread:$0]  (!%p595_p13), %s128_s29, 128, %s130_s3, %s118_s5  }
  0x22   : > { %p619_p2 = pnand %p321_p0, %p153_p1  ;;  %s144_s30 = scalar_lea.hbm %s688_s1, %s318_s24 }
  0x23   : > { %s146_s6 = sshll.u32 %s144_s30, 4  ;;  %s140_s7 = scalar_lea.vmem [#allocation5], %s317_s25  ;;  %s147_s6 = int_to_ptr.hbm [resolvable:$true] %s146_s6 }
  0x24   : > { %s148_s8 = sshll.u32 %s140_s7, 4  ;;  %s137_s14 = scalar_lea.sflag [#allocation6], %s586_s23  ;;  %s149_s8 = int_to_ptr.vmem [resolvable:$true] %s148_s8 }
  0x25   : > { %s410_s16 = sshra.s32 %s147_s6, 4  ;;  %s417_s5 = scalar_lea.hbm %s688_s1, 16  ;;  %s411_s16 = int_to_ptr.hbm [resolvable:$true] %s410_s16 }
  0x26   : > { %s412_s17 = scalar_lea.hbm %s411_s16, 8  ;;  %p418_p4 = scmp.lt.s32.totalorder %s411_s16, %s688_s1 }
  0x27   : > { %p413_p9 = scmp.ne.s32.totalorder %s411_s16, %s412_s17  ;;  %p419_p7 = scmp.lt.s32.totalorder %s417_s5, %s412_s17 }
  0x29   : > { %p415_p0 = pnand %p413_p9, %p384_p3  ;;  %p420_p5 = por %p419_p7, %p418_p4 }
  0x2b   : > { %p416_p1 = pneg %p415_p0 }
  0x2d   : > { %p421_p8 = pnand %p420_p5, %p416_p1 }
  0x2f   : > { %424 = shalt.err (!%p421_p8)
}
  0x30   : > { %341 = dma.hbm_to_vmem [thread:$0]  (!%p595_p13), %s147_s6, 128, %s149_s8, %s137_s14  }
  0x31   : > { %157 = sbr.rel (%p619_p2) target bundleno = 72 (0x48), region = 28  ;;  %s641_s23 = sand.u32 (!%p619_p2), 1, %s502_s10  }
  0x32   : > { %s322_s25 = sshll.u32 (!%p619_p2), %s641_s23, 3  ;;  %s160_s27 = scalar_lea.sflag (!%p619_p2), [#allocation3], %s641_s23 }
  0x33   : > { %s163_s28 = scalar_lea.vmem (!%p619_p2), [#allocation2], %s322_s25 }
  0x36   : > { %485 = dma.done.wait (%p570_p6), %s160_s27, 128  }
  0x37   : > { %487 = vsyncadd (%p570_p6), %s160_s27, 4294967168  ;;  %s170_s4 = scalar_lea.sflag [#allocation6], %s641_s23  ;;  %s173_s30 = scalar_lea.vmem [#allocation5], %s322_s25 }
  0x38   : > { %489 = dma.done.wait (%p570_p6), %s170_s4, 128  }
  0x39   : > { %491 = vsyncadd (%p570_p6), %s170_s4, 4294967168  ;;  %s326_s26 = sshll.u32 %s548_s13, 3  ;;  %v200_v0 = vld [vmem:[%s163_s28] sm:$0xff]  ;;  %v201_v1 = vld [vmem:[%s173_s30] sm:$0xff]  ;;  %s199_s14 = scalar_lea.vmem [#allocation7], %s322_s25 }
  0x3a   : > { %s216_s8 = scalar_lea.hbm %s689_s2, %s326_s26  ;;  %s218_s16 = sshll.u32 %s199_s14, 4  ;;  %v202_v2 = vsub.f32 %v200_v0, %v201_v1  ;;  %s219_s16 = int_to_ptr.vmem [resolvable:$true] %s218_s16 }
  0x3b   : > { %s220_s17 = sshll.u32 %s216_s8, 4  ;;  %s206_s20 = scalar_lea.sflag [#allocation4], %s641_s23  ;;  %s221_s17 = int_to_ptr.hbm [resolvable:$true] %s220_s17 }
  0x3c   : > { %v203_v3 = vand.u32 2147483647, %v202_v2  ;;  %s454_s29 = sshra.s32 %s221_s17, 4  ;;  %s460_s19 = scalar_lea.hbm %s689_s2, 16  ;;  %s455_s29 = int_to_ptr.hbm [resolvable:$true] %s454_s29 }
  0x3d   : > { %s456_s3 = scalar_lea.hbm %s455_s29, 8  ;;  %p461_p10 = scmp.lt.s32.totalorder %s455_s29, %s689_s2 }
  0x3e   : > { %204 = vst [vmem:[%s199_s14] sm:$0xff] %v203_v3  ;;  %p457_p6 = scmp.ne.s32.totalorder %s455_s29, %s456_s3  ;;  %p462_p2 = scmp.lt.s32.totalorder %s460_s19, %s456_s3 }
  0x40   : > { %p458_p13 = pnand %p457_p6, %p577_p11  ;;  %p463_p9 = por %p462_p2, %p461_p10 }
  0x42   : > { %p459_p3 = pneg %p458_p13 }
  0x44   : > { %p464_p0 = pnand %p463_p9, %p459_p3 }
  0x46   : > { %467 = shalt.err (!%p464_p0)
}
  0x47   : > { %333 = dma.vmem_to_hbm [thread:$0]  (%p577_p11), %s219_s16, 128, %s221_s17, %s206_s20  }
  0x48 PF: > { %s232_s23 = sand.u32 1, %s498_s9   ;;  %p696_p1 = scmp.ge.s32.totalorder %s510_s12, 2 }
  0x49   : > { %s233_s27 = scalar_lea.sflag [#allocation4], %s232_s23 }
  0x4a   : > { %p343_p4 = pnand %p696_p1, %p581_p12 }
  0x4c   : > { %p344_p7 = pneg %p343_p4 }
  0x4e   : > { %493 = dma.done.wait (%p344_p7), %s233_s27, 128  }
  0x4f   : > { %495 = vsyncadd (%p344_p7), %s233_s27, 4294967168  ;;  %p18_p5 = scmp.ge.s32.totalorder %s552_s15, 4   ;;  %s697_s9 = smov %s502_s10 }
  0x50   : > { %s698_s10 = smov %s506_s11  ;;  %s699_s11 = smov %s564_s18 }
  0x51   : > { %s700_s12 = smov %s552_s15  ;;  %20 = sbr.rel (!%p18_p5) target bundleno = 7 (0x7), region = 86 }
  0x56   :  { %239 = vsyncpa [#allocation3], 1 }
  0x57   :  { %241 = vsyncpa [#allocation3 + $0x1], 1 }
  0x58   :  { %242 = vsyncpa [#allocation6], 1 }
  0x59   :  { %244 = vsyncpa [#allocation6 + $0x1], 1 }
  0x5a   :  { %245 = vsyncpa [#allocation4], 1 }
  0x5b   :  { %247 = vsyncpa [#allocation4 + $0x1], 1 }

</bundles_post_ra>
